<compile_context>
chip_gen: v5e
topology: v5e:2x2
jax: 0.10.0
libtpu: 0.0.40
codegen_flags: <defaults>
</compile_context>

<pallas_src>
import jax
import jax.numpy as jnp
from jax.experimental import pallas as pl
from jax.experimental.pallas import tpu as pltpu

_LANES = 128          # vreg lane width (last dim of the slab)
_MAX_ROW_TILE = 4096  # 4096*128*4B = 2 MiB/buffer; 4 buffers (in+out, double-buffered) ~ 8 MiB


def _min_sublanes(dtype):
    # f32 -> 8, bf16 -> 16, int8/fp8 -> 32 (sub-32-bit dtypes pack along sublanes).
    return max(8, 32 // jnp.dtype(dtype).itemsize)


def _pick_row_tile(rows, sub):
    """Pick the sublane-dim block size: big (amortize per-step overhead) but
    with >= 2 grid steps when possible (v7x has 2 TensorCores)."""
    if rows <= 2 * sub:
        # Too small to split into two aligned blocks: one full-extent block.
        return rows
    tile = min(_MAX_ROW_TILE, (rows + 1) // 2)   # at least 2 grid steps
    tile = ((tile + sub - 1) // sub) * sub       # block sublane dim must be a multiple of `sub`
    return min(tile, rows)


def _tanh_double_kernel(x_ref, o_ref):
    x = x_ref[...]
    o_ref[...] = jnp.tanh(x + x)


def _run_tanh2x_2d(x2d):
    """Run the elementwise kernel over a lane-dense (rows, 128) slab."""
    rows, lanes = x2d.shape
    sub = _min_sublanes(x2d.dtype)
    row_tile = _pick_row_tile(rows, sub)
    grid = (pl.cdiv(rows, row_tile),)   # last block may be partial; Pallas masks it
    n_elems = rows * lanes
    itemsize = jnp.dtype(x2d.dtype).itemsize

    return pl.pallas_call(
        _tanh_double_kernel,
        out_shape=jax.ShapeDtypeStruct(x2d.shape, x2d.dtype),
        grid_spec=pl.GridSpec(
            grid=grid,
            in_specs=[pl.BlockSpec((row_tile, lanes), lambda i: (i, 0))],
            out_specs=pl.BlockSpec((row_tile, lanes), lambda i: (i, 0)),
        ),
        compiler_params=pltpu.CompilerParams(
            # Independent elementwise row-tiles -> shard across TCs on v7x.
            dimension_semantics=("parallel",),
        ),
        cost_estimate=pl.CostEstimate(
            flops=n_elems,                      # the x + x
            transcendentals=n_elems,            # the tanh
            bytes_accessed=2 * n_elems * itemsize,
        ),
    )(x2d)


def simple_tanh_model(x):
    """Equivalent of SimpleTanhModel.forward: tanh(x + x), same shape/dtype."""
    orig_shape = x.shape
    total = x.size
    flat = x.reshape(-1)

    aligned = (total // _LANES) * _LANES
    tail_n = total - aligned

    if tail_n == 0:
        # Fast path (covers the test input): pure reshape, no extra HBM traffic.
        out = _run_tanh2x_2d(flat.reshape(total // _LANES, _LANES)).reshape(-1)
    else:
        # Non-128-aligned size: process the aligned prefix at full tile size and
        # handle the < 128-element tail with a tiny padded call (only the tail
        # is copied/padded, never the whole array).
        parts = []
        if aligned:
            main2d = flat[:aligned].reshape(aligned // _LANES, _LANES)
            parts.append(_run_tanh2x_2d(main2d).reshape(-1))
        sub = _min_sublanes(flat.dtype)
        tail = flat[aligned:]
        tail2d = jnp.pad(tail, (0, sub * _LANES - tail_n)).reshape(sub, _LANES)
        parts.append(_run_tanh2x_2d(tail2d).reshape(-1)[:tail_n])
        out = jnp.concatenate(parts) if len(parts) > 1 else parts[0]

    return out.reshape(orig_shape)


if __name__ == "__main__":
    key = jax.random.PRNGKey(0)
    # Small NCHW input consistent with the torch test harness.
    x = jax.random.normal(key, (2, 4, 16, 16), dtype=jnp.float32)

    y = simple_tanh_model(x)
    y = jax.block_until_ready(y)

    # Correctness check against the pure-JAX reference (EUP tanh may differ in
    # the last ULP from XLA's tanh, so use a slightly looser tolerance).
    y_ref = jnp.tanh(x + x)
    assert y.shape == x.shape and y.dtype == x.dtype
    assert jnp.allclose(y, y_ref, atol=1e-5, rtol=1e-5)

    print("KERNEL_OK")
</pallas_src>

<mosaic_0001>
module attributes {stable_mosaic.version = 11 : i64} {
  func.func @_tanh_double_kernel(%arg0: i32, %arg1: memref<16x128xf32, #tpu.memory_space<vmem>>, %arg2: memref<16x128xf32, #tpu.memory_space<vmem>>) attributes {dimension_semantics = [#tpu.dimension_semantics<parallel>], iteration_bounds = array<i64: 1>, scalar_prefetch = 0 : i64, scratch_operands = 0 : i64, tpu.core_type = #tpu.core_type<tc>, window_params = [{transform_indices = @transform_0, window_bounds = array<i64: 16, 128>}, {transform_indices = @transform_1, window_bounds = array<i64: 16, 128>}]} {
    %c0 = arith.constant 0 : index
    %c0_0 = arith.constant 0 : index
    %0 = vector.load %arg1[%c0, %c0_0] : memref<16x128xf32, #tpu.memory_space<vmem>>, vector<16x128xf32>
    %1 = arith.addf %0, %0 : vector<16x128xf32>
    %2 = math.tanh %1 : vector<16x128xf32>
    %c0_1 = arith.constant 0 : index
    %c0_2 = arith.constant 0 : index
    %3 = vector.load %arg2[%c0_1, %c0_2] : memref<16x128xf32, #tpu.memory_space<vmem>>, vector<16x128xf32>
    tpu.vector_store %arg2[%c0_1, %c0_2], %2 {strides = array<i32>} : memref<16x128xf32, #tpu.memory_space<vmem>>, vector<16x128xf32>,
    return
  }
  func.func @transform_0(%arg0: i32) -> (i32, i32) {
    %c0_i32 = arith.constant 0 : i32
    %c0_i32_0 = arith.constant 0 : i32
    return %arg0, %c0_i32 : i32, i32
  }
  func.func @transform_1(%arg0: i32) -> (i32, i32) {
    %c0_i32 = arith.constant 0 : i32
    %c0_i32_0 = arith.constant 0 : i32
    return %arg0, %c0_i32 : i32, i32
  }
}

</mosaic_0001>

<bundles_post_ra>
// kernel: tpu_custom_call.1
= control target key start
LH: loop header
LB: loop body
LE: loop exit
PB: predicated region body
PF: predicated region fallthrough
CT: control target
= control target key end

     0   :  { %6 = vsyncpa [#allocation3], 0  ;;  %s132_s0 = inlined_call_operand.hbm [shape: f32[16,128], index: 0, kind: input, shape index: {}]   ;;  %s133_s1 = inlined_call_operand.hbm [shape: f32[16,128], index: 1, kind: output, shape index: {}]  }
   0x1   :  { %7 = vsyncpa [#allocation4], 0  ;;  %s12_s8 = sshll.u32 %s132_s0, 4  ;;  %s112_s9 = smov [#allocation2]   ;;  %s13_s8 = int_to_ptr.hbm [resolvable:$true] %s12_s8 }
   0x2   :  { %s14_s10 = sshll.u32 %s112_s9, 4  ;;  %s113_s11 = smov 128   ;;  %s15_s10 = int_to_ptr.vmem [resolvable:$true] %s14_s10 }
   0x3   :  { %s114_s12 = smov 8  }
   0x4   :  { %20 = dma.hbm_to_vmem [thread:$0]  %s13_s8, 256, %s15_s10, [#allocation3], %s113_s11, %s113_s11, %s114_s12  }
   0x5   :  { %108 = dma.done.wait [#allocation3], 256  }
   0x6   :  { %109 = vsyncadd [#allocation3], 4294967040  ;;  %v25_v0 = vld [vmem:[#allocation2] sm:$0xff]  ;;  %v26_v1 = vld [vmem:[#allocation2 + $0x8] sm:$0xff]  ;;  %s115_s13 = smov [#allocation5]   ;;  %s39_s0 = sshll.u32 %s133_s1, 4  ;;  %s40_s0 = int_to_ptr.hbm [resolvable:$true] %s39_s0 }
   0x7   :  { %v27_v2 = vadd.f32 %v25_v0, %v25_v0  ;;  %v28_v3 = vadd.f32 %v26_v1, %v26_v1  ;;  %s37_s14 = sshll.u32 %s115_s13, 4  ;;  %s38_s14 = int_to_ptr.vmem [resolvable:$true] %s37_s14 }
   0x9   :  { %56 = vtanh.f32 %v27_v2 }
   0xa   :  { %58 = vtanh.f32 %v28_v3 }
   0xf   :  { %v57_v4 = vpop.eup %56 }
  0x10   :  { %v59_v5 = vpop.eup %58  ;;  %31 = vst [vmem:[#allocation5] sm:$0xff] %v57_v4 }
  0x11   :  { %32 = vst [vmem:[#allocation5 + $0x8] sm:$0xff] %v59_v5 }
  0x12   :  { %45 = dma.vmem_to_hbm [thread:$0]  %s38_s14, 256, %s40_s0, [#allocation4], %s113_s11, %s113_s11, %s114_s12  }
  0x13   :  { %110 = dma.done.wait [#allocation4], 256  }
  0x14   :  { %111 = vsyncadd [#allocation4], 4294967040 }
  0x15   :  { %50 = vsyncpa [#allocation3], 1 }
  0x16   :  { %51 = vsyncpa [#allocation4], 1 }

</bundles_post_ra>
